<compile_context>
chip_gen: v7x
topology: tpu7x:2x2x1
jax: 0.10.0
libtpu: 0.0.40
codegen_flags: <defaults>
</compile_context>

<pallas_src>
import math

import jax
import jax.numpy as jnp
from jax.experimental import pallas as pl
from jax.experimental.pallas import tpu as pltpu


def basic_neck_kernel(x_ref, t1_ref, t2_ref, shift_ref, out_ref):
    # x_ref:     (M, WCp)      bf16, M = B*H image rows stacked along sublanes
    # t1_ref:    (3, WCp, WCp) bf16 conv Toeplitz, natural output columns
    # t2_ref:    (3, WCp, WCp) bf16 conv Toeplitz, output columns shifted +2*C
    # shift_ref: (1, WCp)      f32 folded conv-bias + BN shift (tiled across W)
    # out_ref:   (M, WCp)      f32 full slab; per-image rows >= H-4 and lanes
    #                          outside [2C, 2C+(W-4)*C) are junk (cropped in
    #                          the wrapper).
    m = x_ref.shape[0]
    x = x_ref[...]                         # bf16 MXU operand
    shift = shift_ref[...]                 # (1, WCp) f32, hoisted once

    def up(v, k):
        # v_rolled[i] = v[i + k]; wrapped rows only land on per-image rows
        # that are cropped away, so the rotation is safe.
        return pltpu.roll(v, m - k, axis=0)

    # ---- conv1 (+ folded bias/BN) + relu -----------------------------------
    # Three lane-dense matmuls with M = B*H; kh row shift on the XLU after.
    acc = jnp.dot(x, t1_ref[0], preferred_element_type=jnp.float32)
    acc = acc + up(jnp.dot(x, t1_ref[1], preferred_element_type=jnp.float32), 1)
    acc = acc + up(jnp.dot(x, t1_ref[2], preferred_element_type=jnp.float32), 2)
    y1 = jnp.maximum(acc + shift, 0.0).astype(x.dtype)   # back to bf16 for MXU

    # ---- conv2 (+ folded bias/BN) ------------------------------------------
    # T2's output columns are pre-shifted by +2*C lanes so the result lines up
    # with the residual's lanes directly (no in-kernel lane shift).
    acc2 = jnp.dot(y1, t2_ref[0], preferred_element_type=jnp.float32)
    acc2 = acc2 + up(jnp.dot(y1, t2_ref[1], preferred_element_type=jnp.float32), 1)
    acc2 = acc2 + up(jnp.dot(y1, t2_ref[2], preferred_element_type=jnp.float32), 2)

    # ---- residual (x rows shifted by +2) + relu, fully dense store ---------
    resid = up(x.astype(jnp.float32), 2)
    out_ref[...] = jnp.maximum(acc2 + shift + resid, 0.0).astype(out_ref.dtype)


def _build_toeplitz(w_folded, W, C, WCp, n_out, col_offset):
    """T[kh][(j+kw)*C + ci, (j+col_offset)*C + o] = w_folded[kh, kw, ci, o]."""
    j = jnp.arange(n_out)
    pad = WCp - W * C
    mats = []
    for kh in range(3):
        t = jnp.zeros((W * C, W * C), jnp.float32)
        for kw in range(3):
            ind = jnp.zeros((W, W), jnp.float32).at[j + kw, j + col_offset].set(1.0)
            t = t + jnp.kron(ind, w_folded[kh, kw])
        mats.append(jnp.pad(t, ((0, pad), (0, pad))))
    return jnp.stack(mats)                 # (3, WCp, WCp)


def basic_neck(x_nchw, w_oihw, bias, gamma, beta, run_mean, run_var, eps=1e-5):
    """Wrapper: NCHW/OIHW (PyTorch layouts) in, NCHW out."""
    N, C, H, W = x_nchw.shape
    assert H >= 5 and W >= 5, "two valid 3x3 convs need H,W >= 5"
    assert W * C <= 1024, "block-Toeplitz formulation targets small W*C"

    WC = W * C
    WCp = pl.cdiv(WC, 128) * 128           # lane-dense (multiple of 128)
    Ho, Wo = H - 4, W - 4
    WoC = Wo * C

    # ---- batch blocking: stack B images along M so the MXU sees M = B*H ----
    rows_target = 256                      # >=256 on v6e/v7x, >=128 on v5e
    b_align = 8 // math.gcd(H, 8)          # keep B*H a multiple of 8 sublanes
    B = min(N, max(1, rows_target // H))
    B = max(b_align, (B // b_align) * b_align)
    N_pad = pl.cdiv(N, B) * B
    M = B * H
    grid = (N_pad // B,)

    # ---- layout: NHWC, channels packed into lanes, zero-pad to WCp ---------
    x = jnp.transpose(x_nchw, (0, 2, 3, 1)).astype(jnp.float32)     # NHWC
    x = x.reshape(N, H, WC)
    x = jnp.pad(x, ((0, N_pad - N), (0, 0), (0, WCp - WC)))
    x_flat = x.reshape(N_pad * H, WCp).astype(jnp.bfloat16)         # MXU operand

    # ---- fold conv bias + BN (eval) into the weight and one per-C shift ----
    w_hwio = jnp.transpose(w_oihw, (2, 3, 1, 0)).astype(jnp.float32)
    inv_std = 1.0 / jnp.sqrt(run_var.astype(jnp.float32) + eps)
    scale = gamma.astype(jnp.float32) * inv_std
    bn_shift = beta.astype(jnp.float32) - run_mean.astype(jnp.float32) * scale
    w_folded = w_hwio * scale[None, None, None, :]
    shift_total = bias.astype(jnp.float32) * scale + bn_shift        # (C,)
    shift_wc = jnp.pad(jnp.tile(shift_total, W), (0, WCp - WC)).reshape(1, WCp)

    t1 = _build_toeplitz(w_folded, W, C, WCp, W - 2, 0).astype(jnp.bfloat16)
    t2 = _build_toeplitz(w_folded, W, C, WCp, W - 4, 2).astype(jnp.bfloat16)

    # ---- VMEM / cost bookkeeping -------------------------------------------
    weight_bytes = 2 * 3 * WCp * WCp * 2              # both Toeplitz sets, bf16
    block_bytes = M * WCp * (2 + 4)                   # x (bf16) + out (f32)
    vmem_est = 2 * weight_bytes + 2 * block_bytes + 6 * M * WCp * 4
    vmem_limit = int(min(max(2 * vmem_est, 32 * 1024 * 1024), 48 * 1024 * 1024))
    flops = 2 * (N_pad * H) * WCp * WCp * 6
    bytes_accessed = (N_pad * H * WCp * 2 + weight_bytes + WCp * 4
                      + N_pad * H * WCp * 4)

    out_flat = pl.pallas_call(
        basic_neck_kernel,
        out_shape=jax.ShapeDtypeStruct((N_pad * H, WCp), jnp.float32),
        grid=grid,
        in_specs=[
            pl.BlockSpec((M, WCp), lambda n: (n, 0)),          # batch block
            pl.BlockSpec((3, WCp, WCp), lambda n: (0, 0, 0)),  # resident weight
            pl.BlockSpec((3, WCp, WCp), lambda n: (0, 0, 0)),  # resident weight
            pl.BlockSpec((1, WCp), lambda n: (0, 0)),          # resident shift
        ],
        out_specs=pl.BlockSpec((M, WCp), lambda n: (n, 0)),
        compiler_params=pltpu.CompilerParams(
            dimension_semantics=("parallel",),
            vmem_limit_bytes=vmem_limit),
        cost_estimate=pl.CostEstimate(flops=flops, transcendentals=0,
                                      bytes_accessed=bytes_accessed),
    )(x_flat, t1, t2, shift_wc)

    # Cheap row/lane crop + layout plumbing outside the kernel (fused by XLA).
    out = out_flat.reshape(N_pad, H, WCp)[:N, :Ho, 2 * C:2 * C + WoC]
    out = out.reshape(N, Ho, Wo, C)
    return jnp.transpose(out, (0, 3, 1, 2))                          # NCHW


def basic_neck_reference(x_nchw, w_oihw, bias, gamma, beta, run_mean, run_var,
                         eps=1e-5):
    """Pure-JAX f32 reference (same math, XLA conv) for correctness checking."""
    x = jnp.transpose(x_nchw, (0, 2, 3, 1)).astype(jnp.float32)
    w = jnp.transpose(w_oihw, (2, 3, 1, 0)).astype(jnp.float32)

    def conv(t):
        return jax.lax.conv_general_dilated(
            t, w, window_strides=(1, 1), padding='VALID',
            dimension_numbers=('NHWC', 'HWIO', 'NHWC')) + bias

    def bn(t):
        return gamma * (t - run_mean) / jnp.sqrt(run_var + eps) + beta

    y = jax.nn.relu(bn(conv(x)))
    y = bn(conv(y))
    out = jax.nn.relu(y + x[:, 2:-2, 2:-2, :])
    return jnp.transpose(out, (0, 3, 1, 2))


if __name__ == "__main__":
    # small shapes: batch=2, plance=8 channels, spatial 12x14 (NCHW like PyTorch)
    N, C, H, W = 2, 8, 12, 14
    key = jax.random.PRNGKey(0)
    kx, kw, kb, kg, kbeta, km, kv = jax.random.split(key, 7)

    x = jax.random.normal(kx, (N, C, H, W), dtype=jnp.float32)
    conv_w = 0.1 * jax.random.normal(kw, (C, C, 3, 3), dtype=jnp.float32)  # OIHW
    conv_b = 0.1 * jax.random.normal(kb, (C,), dtype=jnp.float32)
    bn_gamma = 1.0 + 0.1 * jax.random.normal(kg, (C,), dtype=jnp.float32)
    bn_beta = 0.1 * jax.random.normal(kbeta, (C,), dtype=jnp.float32)
    bn_mean = 0.05 * jax.random.normal(km, (C,), dtype=jnp.float32)
    bn_var = 0.5 + jnp.abs(jax.random.normal(kv, (C,), dtype=jnp.float32))

    out = basic_neck(x, conv_w, conv_b, bn_gamma, bn_beta, bn_mean, bn_var)
    out = jax.block_until_ready(out)

    ref = basic_neck_reference(x, conv_w, conv_b, bn_gamma, bn_beta,
                               bn_mean, bn_var)
    assert out.shape == (N, C, H - 4, W - 4), out.shape
    # bf16 MXU operands (f32 accumulation) -> loosened tolerance vs f32 ref;
    # structural bugs would show O(1) errors and still fail this check.
    assert jnp.allclose(out, ref, atol=5e-2, rtol=5e-2), \
        float(jnp.max(jnp.abs(out - ref)))
    print("KERNEL_OK")
</pallas_src>

<mosaic_0001>
module attributes {stable_mosaic.version = 11 : i64} {
  func.func @basic_neck_kernel(%arg0: i32, %arg1: memref<24x128xbf16, #tpu.memory_space<vmem>>, %arg2: memref<3x128x128xbf16, #tpu.memory_space<vmem>>, %arg3: memref<3x128x128xbf16, #tpu.memory_space<vmem>>, %arg4: memref<1x128xf32, #tpu.memory_space<vmem>>, %arg5: memref<24x128xf32, #tpu.memory_space<vmem>>) attributes {dimension_semantics = [#tpu.dimension_semantics<parallel>], iteration_bounds = array<i64: 1>, scalar_prefetch = 0 : i64, scratch_operands = 0 : i64, tpu.core_type = #tpu.core_type<tc>, window_params = [{transform_indices = @transform_0, window_bounds = array<i64: 24, 128>}, {pipeline_mode = #tpu.pipeline_mode<synchronous>, transform_indices = @transform_1, window_bounds = array<i64: 3, 128, 128>}, {pipeline_mode = #tpu.pipeline_mode<synchronous>, transform_indices = @transform_2, window_bounds = array<i64: 3, 128, 128>}, {pipeline_mode = #tpu.pipeline_mode<synchronous>, transform_indices = @transform_3, window_bounds = array<i64: 1, 128>}, {transform_indices = @transform_4, window_bounds = array<i64: 24, 128>}]} {
    %c0 = arith.constant 0 : index
    %c0_0 = arith.constant 0 : index
    %0 = vector.load %arg1[%c0, %c0_0] : memref<24x128xbf16, #tpu.memory_space<vmem>>, vector<24x128xbf16>
    %c0_1 = arith.constant 0 : index
    %c0_2 = arith.constant 0 : index
    %1 = vector.load %arg4[%c0_1, %c0_2] : memref<1x128xf32, #tpu.memory_space<vmem>>, vector<1x128xf32>
    %c0_3 = arith.constant 0 : index
    %c0_4 = arith.constant 0 : index
    %c0_5 = arith.constant 0 : index
    %2 = vector.load %arg2[%c0_3, %c0_4, %c0_5] : memref<3x128x128xbf16, #tpu.memory_space<vmem>>, vector<1x128x128xbf16>
    %3 = vector.shape_cast %2 : vector<1x128x128xbf16> to vector<128x128xbf16>
    %cst = arith.constant dense<0.000000e+00> : vector<24x128xf32>
    %4 = tpu.matmul %0, %3, %cst {dimension_numbers = #tpu.dot_dimension_numbers<[1], [0], [0], [1], [0, 0, 1, 1], [], []>} : vector<24x128xbf16>, vector<128x128xbf16>, vector<24x128xf32> -> vector<24x128xf32>
    %c1 = arith.constant 1 : index
    %c0_6 = arith.constant 0 : index
    %c0_7 = arith.constant 0 : index
    %5 = vector.load %arg2[%c1, %c0_6, %c0_7] : memref<3x128x128xbf16, #tpu.memory_space<vmem>>, vector<1x128x128xbf16>
    %6 = vector.shape_cast %5 : vector<1x128x128xbf16> to vector<128x128xbf16>
    %cst_8 = arith.constant dense<0.000000e+00> : vector<24x128xf32>
    %7 = tpu.matmul %0, %6, %cst_8 {dimension_numbers = #tpu.dot_dimension_numbers<[1], [0], [0], [1], [0, 0, 1, 1], [], []>} : vector<24x128xbf16>, vector<128x128xbf16>, vector<24x128xf32> -> vector<24x128xf32>
    %c23_i32 = arith.constant 23 : i32
    %8 = tpu.dynamic_rotate %7 by %c23_i32 dim 0 : vector<24x128xf32>, i32 -> vector<24x128xf32>
    %9 = arith.addf %4, %8 : vector<24x128xf32>
    %c2 = arith.constant 2 : index
    %c0_9 = arith.constant 0 : index
    %c0_10 = arith.constant 0 : index
    %10 = vector.load %arg2[%c2, %c0_9, %c0_10] : memref<3x128x128xbf16, #tpu.memory_space<vmem>>, vector<1x128x128xbf16>
    %11 = vector.shape_cast %10 : vector<1x128x128xbf16> to vector<128x128xbf16>
    %cst_11 = arith.constant dense<0.000000e+00> : vector<24x128xf32>
    %12 = tpu.matmul %0, %11, %cst_11 {dimension_numbers = #tpu.dot_dimension_numbers<[1], [0], [0], [1], [0, 0, 1, 1], [], []>} : vector<24x128xbf16>, vector<128x128xbf16>, vector<24x128xf32> -> vector<24x128xf32>
    %c22_i32 = arith.constant 22 : i32
    %13 = tpu.dynamic_rotate %12 by %c22_i32 dim 0 : vector<24x128xf32>, i32 -> vector<24x128xf32>
    %14 = arith.addf %9, %13 : vector<24x128xf32>
    %15 = vector.broadcast %1 : vector<1x128xf32> to vector<24x128xf32>
    %16 = arith.addf %14, %15 : vector<24x128xf32>
    %cst_12 = arith.constant 0.000000e+00 : f32
    %17 = vector.broadcast %cst_12 : f32 to vector<24x128xf32>
    %18 = arith.maximumf %16, %17 : vector<24x128xf32>
    %19 = arith.truncf %18 : vector<24x128xf32> to vector<24x128xbf16>
    %c0_13 = arith.constant 0 : index
    %c0_14 = arith.constant 0 : index
    %c0_15 = arith.constant 0 : index
    %20 = vector.load %arg3[%c0_13, %c0_14, %c0_15] : memref<3x128x128xbf16, #tpu.memory_space<vmem>>, vector<1x128x128xbf16>
    %21 = vector.shape_cast %20 : vector<1x128x128xbf16> to vector<128x128xbf16>
    %cst_16 = arith.constant dense<0.000000e+00> : vector<24x128xf32>
    %22 = tpu.matmul %19, %21, %cst_16 {dimension_numbers = #tpu.dot_dimension_numbers<[1], [0], [0], [1], [0, 0, 1, 1], [], []>} : vector<24x128xbf16>, vector<128x128xbf16>, vector<24x128xf32> -> vector<24x128xf32>
    %c1_17 = arith.constant 1 : index
    %c0_18 = arith.constant 0 : index
    %c0_19 = arith.constant 0 : index
    %23 = vector.load %arg3[%c1_17, %c0_18, %c0_19] : memref<3x128x128xbf16, #tpu.memory_space<vmem>>, vector<1x128x128xbf16>
    %24 = vector.shape_cast %23 : vector<1x128x128xbf16> to vector<128x128xbf16>
    %cst_20 = arith.constant dense<0.000000e+00> : vector<24x128xf32>
    %25 = tpu.matmul %19, %24, %cst_20 {dimension_numbers = #tpu.dot_dimension_numbers<[1], [0], [0], [1], [0, 0, 1, 1], [], []>} : vector<24x128xbf16>, vector<128x128xbf16>, vector<24x128xf32> -> vector<24x128xf32>
    %c23_i32_21 = arith.constant 23 : i32
    %26 = tpu.dynamic_rotate %25 by %c23_i32_21 dim 0 : vector<24x128xf32>, i32 -> vector<24x128xf32>
    %27 = arith.addf %22, %26 : vector<24x128xf32>
    %c2_22 = arith.constant 2 : index
    %c0_23 = arith.constant 0 : index
    %c0_24 = arith.constant 0 : index
    %28 = vector.load %arg3[%c2_22, %c0_23, %c0_24] : memref<3x128x128xbf16, #tpu.memory_space<vmem>>, vector<1x128x128xbf16>
    %29 = vector.shape_cast %28 : vector<1x128x128xbf16> to vector<128x128xbf16>
    %cst_25 = arith.constant dense<0.000000e+00> : vector<24x128xf32>
    %30 = tpu.matmul %19, %29, %cst_25 {dimension_numbers = #tpu.dot_dimension_numbers<[1], [0], [0], [1], [0, 0, 1, 1], [], []>} : vector<24x128xbf16>, vector<128x128xbf16>, vector<24x128xf32> -> vector<24x128xf32>
    %c22_i32_26 = arith.constant 22 : i32
    %31 = tpu.dynamic_rotate %30 by %c22_i32_26 dim 0 : vector<24x128xf32>, i32 -> vector<24x128xf32>
    %32 = arith.addf %27, %31 : vector<24x128xf32>
    %33 = arith.extf %0 : vector<24x128xbf16> to vector<24x128xf32>
    %c22_i32_27 = arith.constant 22 : i32
    %34 = tpu.dynamic_rotate %33 by %c22_i32_27 dim 0 : vector<24x128xf32>, i32 -> vector<24x128xf32>
    %35 = vector.broadcast %1 : vector<1x128xf32> to vector<24x128xf32>
    %36 = arith.addf %32, %35 : vector<24x128xf32>
    %37 = arith.addf %36, %34 : vector<24x128xf32>
    %cst_28 = arith.constant 0.000000e+00 : f32
    %38 = vector.broadcast %cst_28 : f32 to vector<24x128xf32>
    %39 = arith.maximumf %37, %38 : vector<24x128xf32>
    %c0_29 = arith.constant 0 : index
    %c0_30 = arith.constant 0 : index
    %40 = vector.load %arg5[%c0_29, %c0_30] : memref<24x128xf32, #tpu.memory_space<vmem>>, vector<24x128xf32>
    tpu.vector_store %arg5[%c0_29, %c0_30], %39 {strides = array<i32>} : memref<24x128xf32, #tpu.memory_space<vmem>>, vector<24x128xf32>,
    return
  }
  func.func @transform_0(%arg0: i32) -> (i32, i32) {
    %c0_i32 = arith.constant 0 : i32
    %c0_i32_0 = arith.constant 0 : i32
    return %arg0, %c0_i32 : i32, i32
  }
  func.func @transform_1(%arg0: i32) -> (i32, i32, i32) {
    %c0_i32 = arith.constant 0 : i32
    %c0_i32_0 = arith.constant 0 : i32
    %c0_i32_1 = arith.constant 0 : i32
    %c0_i32_2 = arith.constant 0 : i32
    return %c0_i32, %c0_i32_0, %c0_i32_1 : i32, i32, i32
  }
  func.func @transform_2(%arg0: i32) -> (i32, i32, i32) {
    %c0_i32 = arith.constant 0 : i32
    %c0_i32_0 = arith.constant 0 : i32
    %c0_i32_1 = arith.constant 0 : i32
    %c0_i32_2 = arith.constant 0 : i32
    return %c0_i32, %c0_i32_0, %c0_i32_1 : i32, i32, i32
  }
  func.func @transform_3(%arg0: i32) -> (i32, i32) {
    %c0_i32 = arith.constant 0 : i32
    %c0_i32_0 = arith.constant 0 : i32
    %c0_i32_1 = arith.constant 0 : i32
    return %c0_i32, %c0_i32_0 : i32, i32
  }
  func.func @transform_4(%arg0: i32) -> (i32, i32) {
    %c0_i32 = arith.constant 0 : i32
    %c0_i32_0 = arith.constant 0 : i32
    return %arg0, %c0_i32 : i32, i32
  }
}

</mosaic_0001>

<bundles_post_ra>
// kernel: tpu_custom_call.1
= control target key start
LH: loop header
LB: loop body
LE: loop exit
PB: predicated region body
PF: predicated region fallthrough
CT: control target
= control target key end

     0   :  { %9 = vsyncpa [#allocation3], 0  ;;  %s1375_s0 = inlined_call_operand.hbm [shape: bf16[24,128], index: 0, kind: input, shape index: {}]   ;;  %s1376_s1 = inlined_call_operand.hbm [shape: bf16[3,128,128], index: 1, kind: input, shape index: {}]   ;;  %s1377_s2 = inlined_call_operand.hbm [shape: bf16[3,128,128], index: 2, kind: input, shape index: {}]   ;;  %s1378_s3 = inlined_call_operand.vmem [shape: f32[1,128], index: 3, kind: input, shape index: {}]   ;;  %s1379_s4 = inlined_call_operand.hbm [shape: f32[24,128], index: 4, kind: output, shape index: {}]  }
   0x1   :  { %10 = vsyncpa [#allocation6], 0 }
   0x2   :  { %11 = vsyncpa [#allocation4], 0  ;;  %s1221_s15 = smov [#allocation5]   ;;  %s1222_s17 = smov [#allocation2]  }
   0x3   :  { %s29_s16 = sshll.u32 %s1221_s15, 4  ;;  %s17_s18 = sshll.u32 %s1222_s17, 4  ;;  %s30_s16 = int_to_ptr.vmem [resolvable:$true] %s29_s16  ;;  %s1254_s18 = int_to_ptr.vmem [resolvable:$true] %s17_s18 }
   0x4   :  { %s1127_s21 = scalar_lea.hbm %s1376_s1, 3072 }
   0x5   :  { %p1128_p0 = scmp.ne.s32.totalorder %s1376_s1, %s1127_s21  ;;  %p1131_p1 = scmp.lt.u32.totalorder %s1127_s21, %s1376_s1 }
   0x7   :  { %p1133_p2 = pnand %p1131_p1, %p1128_p0 }
   0x9   :  { %1136 = shalt.err (!%p1133_p2)
}
   0xa   :  { %s1137_s26 = scalar_lea.vmem %s30_s16, 3072  ;;  %p1142_p4 = scmp.lt.s32.totalorder %s30_s16, %s30_s16 }
   0xb   :  { %p1138_p3 = scmp.ne.s32.totalorder %s30_s16, %s1137_s26  ;;  %p1143_p5 = scmp.lt.s32.totalorder %s1137_s26, %s1137_s26 }
   0xd   :  { %p1144_p6 = por %p1143_p5, %p1142_p4 }
   0xf   :  { %p1145_p7 = pnand %p1144_p6, %p1138_p3 }
  0x11   :  { %1148 = shalt.err (!%p1145_p7)
}
  0x12   :  { %s1223_s27 = smov 64   ;;  %s1224_s28 = smov 4  }
  0x13   :  { %35 = dma.hbm_to_vmem [thread:$0]  %s1376_s1, 3072, %s30_s16, [#allocation6], %s1223_s27, %s1223_s27, %s1224_s28  }
  0x14   :  { %s1149_s7 = scalar_lea.hbm %s1375_s0, 192 }
  0x15   :  { %p1150_p8 = scmp.ne.s32.totalorder %s1375_s0, %s1149_s7  ;;  %p1153_p9 = scmp.lt.u32.totalorder %s1149_s7, %s1375_s0 }
  0x17   :  { %p1155_p10 = pnand %p1153_p9, %p1150_p8 }
  0x19   :  { %1158 = shalt.err (!%p1155_p10)
}
  0x1a   :  { %s1159_s12 = scalar_lea.vmem %s1254_s18, 192  ;;  %p1164_p12 = scmp.lt.s32.totalorder %s1254_s18, %s1254_s18 }
  0x1b   :  { %p1160_p11 = scmp.ne.s32.totalorder %s1254_s18, %s1159_s12  ;;  %p1165_p13 = scmp.lt.s32.totalorder %s1159_s12, %s1159_s12 }
  0x1d   :  { %p1166_p0 = por %p1165_p13, %p1164_p12 }
  0x1f   :  { %p1167_p1 = pnand %p1166_p0, %p1160_p11 }
  0x21   :  { %1170 = shalt.err (!%p1167_p1)
}
  0x22   :  { %23 = dma.hbm_to_vmem [thread:$0]  %s1375_s0, 192, %s1254_s18, [#allocation3], %s1223_s27, %s1223_s27, %s1224_s28  }
  0x23   :  { %s1225_s14 = smov [#allocation7]   ;;  %s1171_s19 = scalar_lea.hbm %s1377_s2, 3072 }
  0x24   :  { %s41_s15 = sshll.u32 %s1225_s14, 4  ;;  %p1172_p2 = scmp.ne.s32.totalorder %s1377_s2, %s1171_s19  ;;  %s42_s15 = int_to_ptr.vmem [resolvable:$true] %s41_s15 }
  0x25   :  { %p1175_p3 = scmp.lt.u32.totalorder %s1171_s19, %s1377_s2 }
  0x27   :  { %p1177_p4 = pnand %p1175_p3, %p1172_p2 }
  0x29   :  { %1180 = shalt.err (!%p1177_p4)
}
  0x2a   :  { %s1181_s24 = scalar_lea.vmem %s42_s15, 3072  ;;  %p1186_p6 = scmp.lt.s32.totalorder %s42_s15, %s42_s15 }
  0x2b   :  { %p1182_p5 = scmp.ne.s32.totalorder %s42_s15, %s1181_s24  ;;  %p1187_p7 = scmp.lt.s32.totalorder %s1181_s24, %s1181_s24 }
  0x2d   :  { %p1188_p8 = por %p1187_p7, %p1186_p6 }
  0x2f   :  { %p1189_p9 = pnand %p1188_p8, %p1182_p5 }
  0x31   :  { %1192 = shalt.err (!%p1189_p9)
}
  0x32   :  { %47 = dma.hbm_to_vmem [thread:$0]  %s1377_s2, 3072, %s42_s15, [#allocation6], %s1223_s27, %s1223_s27, %s1224_s28  }
  0x33   :  { %1215 = dma.done.wait [#allocation3], 192  }
  0x34   :  { %1216 = vsyncadd [#allocation3], 4294967104 }
  0x35   :  { %1217 = dma.done.wait [#allocation6], 6144  }
  0x36   :  { %1218 = vsyncadd [#allocation6], 4294961152  ;;  %v1076_v0 = vld [vmem:[#allocation5 + $0x40] sm:$0xff]   ;;  %v1078_v2 = vld [vmem:[#allocation5 + $0x48] sm:$0xff]   ;;  %v206_v44 = vlaneseq }
  0x37   :  { %v1077_v1 = vld [vmem:[#allocation5] sm:$0xff]   ;;  %948 = vmatprep.subr.bf16.mxu0 %v1076_v0  ;;  %v1079_v3 = vld [vmem:[#allocation5 + $0x8] sm:$0xff]   ;;  %v1080_v4 = vld [vmem:[#allocation5 + $0x50] sm:$0xff]  }
  0x38   :  { %949 = vmatpush3.bf16.msra.mxu0 %v1076_v0  ;;  %968 = vmatprep.subr.bf16.mxu1 %v1077_v1  ;;  %v1081_v5 = vld [vmem:[#allocation5 + $0x10] sm:$0xff]   ;;  %v1082_v6 = vld [vmem:[#allocation5 + $0x58] sm:$0xff]   ;;  %v1084_v8 = vld [vmem:[#allocation5 + $0x60] sm:$0xff]   ;;  %v1315_v45 = vshrl.u32 %v206_v44, 7 }
  0x39   :  { %950 = vmatprep.subr.bf16.mxu0 %v1078_v2  ;;  %969 = vmatpush3.bf16.msra.mxu1 %v1077_v1  ;;  %v1083_v7 = vld [vmem:[#allocation5 + $0x18] sm:$0xff]   ;;  %v1085_v9 = vld [vmem:[#allocation5 + $0x20] sm:$0xff]   ;;  %v1086_v11 = vld [vmem:[#allocation5 + $0x68] sm:$0xff]  }
  0x3a   :  { %970 = vmatprep.subr.bf16.mxu1 %v1079_v3  ;;  %v1306_v10 = vld [vmem:[#allocation2] sm:$0xff]   ;;  %v1087_v12 = vld [vmem:[#allocation5 + $0x28] sm:$0xff]   ;;  %v1310_v17 = vld [vmem:[#allocation2 + $0x8] sm:$0xf]  ;;  %vm208_vm0 = vcmp.lt.s32.totalorder %v1315_v45, 7  ;;  %vm424_vm1 = vcmp.lt.s32.totalorder %v1315_v45, 6 }
  0x3b   :  { %964 = vmatprep.mubr.bf16.mxu0 %v1306_v10  ;;  %984 = vmatprep.mubr.bf16.mxu1 %v1306_v10  ;;  %v1088_v13 = vld [vmem:[#allocation5 + $0x70] sm:$0xff]   ;;  %v1090_v15 = vld [vmem:[#allocation5 + $0x78] sm:$0xff]   ;;  %v1094_v18 = vld [vmem:[#allocation5 + $0x80] sm:$0xff]   ;;  %v838_v19 = vcombine.low %v1310_v17, %v1310_v17 }
  0x3c   :  { %951 = vmatpush3.bf16.msra.mxu0 %v1078_v2  ;;  %v1089_v14 = vld [vmem:[#allocation5 + $0x30] sm:$0xff]   ;;  %v1092_v16 = vld [vmem:[#allocation5 + $0x38] sm:$0xff]   ;;  %v1095_v20 = vld [vmem:[#allocation5 + $0x88] sm:$0xff]  }
  0x3d   :  { %952 = vmatprep.subr.bf16.mxu0 %v1080_v4  ;;  %971 = vmatpush3.bf16.msra.mxu1 %v1079_v3  ;;  %v1096_v21 = vld [vmem:[#allocation5 + $0x90] sm:$0xff]   ;;  %v1097_v22 = vld [vmem:[#allocation5 + $0x98] sm:$0xff]   ;;  %v1098_v23 = vld [vmem:[#allocation5 + $0xa0] sm:$0xff]  }
  0x3e   :  { %972 = vmatprep.subr.bf16.mxu1 %v1081_v5  ;;  %v1099_v24 = vld [vmem:[#allocation5 + $0xa8] sm:$0xff]   ;;  %v1100_v25 = vld [vmem:[#allocation5 + $0xb0] sm:$0xff]   ;;  %v1101_v26 = vld [vmem:[#allocation5 + $0xb8] sm:$0xff]  }
  0x3f   :  { %v1102_v27 = vld [vmem:[#allocation7 + $0x40] sm:$0xff]   ;;  %v1104_v29 = vld [vmem:[#allocation7 + $0x48] sm:$0xff]   ;;  %v1106_v31 = vld [vmem:[#allocation7 + $0x50] sm:$0xff]  }
  0x40   :  { %953 = vmatpush3.bf16.msra.mxu0 %v1080_v4  ;;  %v1103_v28 = vld [vmem:[#allocation7] sm:$0xff]   ;;  %v1105_v30 = vld [vmem:[#allocation7 + $0x8] sm:$0xff]   ;;  %v1107_v32 = vld [vmem:[#allocation7 + $0x10] sm:$0xff]  }
  0x41   :  { %954 = vmatprep.subr.bf16.mxu0 %v1082_v6  ;;  %973 = vmatpush3.bf16.msra.mxu1 %v1081_v5  ;;  %v1108_v33 = vld [vmem:[#allocation7 + $0x58] sm:$0xff]   ;;  %v1110_v35 = vld [vmem:[#allocation7 + $0x60] sm:$0xff]   ;;  %v1112_v37 = vld [vmem:[#allocation7 + $0x68] sm:$0xff]  }
  0x42   :  { %974 = vmatprep.subr.bf16.mxu1 %v1083_v7  ;;  %v1109_v34 = vld [vmem:[#allocation7 + $0x18] sm:$0xff]   ;;  %v1111_v36 = vld [vmem:[#allocation7 + $0x20] sm:$0xff]   ;;  %v1113_v38 = vld [vmem:[#allocation7 + $0x28] sm:$0xff]  }
  0x43   :  { %v1114_v39 = vld [vmem:[#allocation7 + $0x70] sm:$0xff]   ;;  %v1116_v41 = vld [vmem:[#allocation7 + $0x78] sm:$0xff]   ;;  %v1118_v43 = vld [vmem:[#allocation7 + $0x80] sm:$0xff]  }
  0x44   :  { %955 = vmatpush3.bf16.msra.mxu0 %v1082_v6  ;;  %v1115_v40 = vld [vmem:[#allocation7 + $0x30] sm:$0xff]   ;;  %v1117_v42 = vld [vmem:[#allocation7 + $0x38] sm:$0xff]  }
  0x45   :  { %956 = vmatprep.subr.bf16.mxu0 %v1084_v8  ;;  %975 = vmatpush3.bf16.msra.mxu1 %v1083_v7  ;;  %v1328_v5 = vld [vmem:[%s1378_s3] ss:$0 sm:$0xff]  ;;  %s1226_s3 = smov [#allocation8]  }
  0x46   :  { %976 = vmatprep.subr.bf16.mxu1 %v1085_v9  ;;  %s824_s26 = sshll.u32 %s1226_s3, 4  ;;  %s825_s26 = int_to_ptr.vmem [resolvable:$true] %s824_s26 }
  0x47   :  { %s1193_s27 = scalar_lea.vmem %s825_s26, 384  ;;  %p1198_p11 = scmp.lt.s32.totalorder %s825_s26, %s825_s26 }
  0x48   :  { %957 = vmatpush3.bf16.msra.mxu0 %v1084_v8  ;;  %p1194_p10 = scmp.ne.s32.totalorder %s825_s26, %s1193_s27  ;;  %p1199_p12 = scmp.lt.s32.totalorder %s1193_s27, %s1193_s27 }
  0x49   :  { %958 = vmatprep.subr.bf16.mxu0 %v1086_v11  ;;  %977 = vmatpush3.bf16.msra.mxu1 %v1085_v9 }
  0x4a   :  { %978 = vmatprep.subr.bf16.mxu1 %v1087_v12  ;;  %p1200_p13 = por %p1199_p12, %p1198_p11 }
  0x4c   :  { %959 = vmatpush3.bf16.msra.mxu0 %v1086_v11  ;;  %p1201_p0 = pnand %p1200_p13, %p1194_p10 }
  0x4d   :  { %960 = vmatprep.subr.bf16.mxu0 %v1088_v13  ;;  %979 = vmatpush3.bf16.msra.mxu1 %v1087_v12 }
  0x4e   :  { %980 = vmatprep.subr.bf16.mxu1 %v1089_v14 }
  0x50   :  { %961 = vmatpush3.bf16.msra.mxu0 %v1088_v13 }
  0x51   :  { %962 = vmatprep.subr.bf16.mxu0 %v1090_v15  ;;  %981 = vmatpush3.bf16.msra.mxu1 %v1089_v14 }
  0x52   :  { %982 = vmatprep.subr.bf16.mxu1 %v1092_v16 }
  0x54   :  { %963 = vmatpush3.bf16.msra.mxu0 %v1090_v15 }
  0x55   :  { %983 = vmatpush3.bf16.msra.mxu1 %v1092_v16  ;;  %988 = vmatprep.subr.bf16.mxu0 %v1094_v18 }
  0x56   :  { %1008 = vmatprep.subr.bf16.mxu1 %v1102_v27 }
  0x57   :  { %965 = vmatmul.mubr.bf16.vlgmr.msra.gmra.mrb[0].mxu0 %v838_v19 }
  0x58   :  { %989 = vmatpush3.bf16.msra.mxu0 %v1094_v18  ;;  %985 = vmatmul.mubr.bf16.vlgmr.msra.gmra.mrb[0].mxu1 %v838_v19 }
  0x59   :  { %990 = vmatprep.subr.bf16.mxu0 %v1095_v20  ;;  %1004 = vmatprep.mubr.bf16.mxu0 %v1306_v10 }
  0x5a   :  { %1009 = vmatpush3.bf16.msra.mxu1 %v1102_v27  ;;  %v1123_v27 = vld [vmem:[#allocation7 + $0xa8] sm:$0xff]  }
  0x5b   :  { %1010 = vmatprep.subr.bf16.mxu1 %v1104_v29 }
  0x5c   :  { %991 = vmatpush3.bf16.msra.mxu0 %v1095_v20 }
  0x5d   :  { %992 = vmatprep.subr.bf16.mxu0 %v1096_v21 }
  0x5e   :  { %1011 = vmatpush3.bf16.msra.mxu1 %v1104_v29  ;;  %v1125_v29 = vld [vmem:[#allocation7 + $0xb8] sm:$0xff]  }
  0x5f   :  { %1012 = vmatprep.subr.bf16.mxu1 %v1106_v31 }
  0x60   :  { %993 = vmatpush3.bf16.msra.mxu0 %v1096_v21 }
  0x61   :  { %994 = vmatprep.subr.bf16.mxu0 %v1097_v22 }
  0x62   :  { %1013 = vmatpush3.bf16.msra.mxu1 %v1106_v31  ;;  %v800_v31 = vunpack.c.l.bf16 %v1310_v17 }
  0x63   :  { %1014 = vmatprep.subr.bf16.mxu1 %v1108_v33 }
  0x64   :  { %995 = vmatpush3.bf16.msra.mxu0 %v1097_v22 }
  0x65   :  { %996 = vmatprep.subr.bf16.mxu0 %v1098_v23 }
  0x66   :  { %1015 = vmatpush3.bf16.msra.mxu1 %v1108_v33  ;;  %v803_v33 = vrot.slane %v800_v31, 2 }
  0x67   :  { %1016 = vmatprep.subr.bf16.mxu1 %v1110_v35 }
  0x68   :  { %997 = vmatpush3.bf16.msra.mxu0 %v1098_v23  ;;  %v1119_v23 = vld [vmem:[#allocation7 + $0x88] sm:$0xff]  }
  0x69   :  { %998 = vmatprep.subr.bf16.mxu0 %v1099_v24 }
  0x6a   :  { %1017 = vmatpush3.bf16.msra.mxu1 %v1110_v35 }
  0x6b   :  { %1018 = vmatprep.subr.bf16.mxu1 %v1112_v37 }
  0x6c   :  { %999 = vmatpush3.bf16.msra.mxu0 %v1099_v24  ;;  %v1120_v24 = vld [vmem:[#allocation7 + $0x90] sm:$0xff]  }
  0x6d   :  { %1000 = vmatprep.subr.bf16.mxu0 %v1100_v25 }
  0x6e   :  { %1019 = vmatpush3.bf16.msra.mxu1 %v1112_v37 }
  0x6f   :  { %1020 = vmatprep.subr.bf16.mxu1 %v1114_v39 }
  0x70   :  { %1001 = vmatpush3.bf16.msra.mxu0 %v1100_v25  ;;  %v1121_v25 = vld [vmem:[#allocation7 + $0x98] sm:$0xff]  }
  0x71   :  { %1002 = vmatprep.subr.bf16.mxu0 %v1101_v26 }
  0x72   :  { %1021 = vmatpush3.bf16.msra.mxu1 %v1114_v39 }
  0x73   :  { %1022 = vmatprep.subr.bf16.mxu1 %v1116_v41 }
  0x74   :  { %1003 = vmatpush3.bf16.msra.mxu0 %v1101_v26  ;;  %v1122_v26 = vld [vmem:[#allocation7 + $0xa0] sm:$0xff]  }
  0x75   :  { %1028 = vmatprep.subr.bf16.mxu0 %v1103_v28 }
  0x76   :  { %1023 = vmatpush3.bf16.msra.mxu1 %v1116_v41 }
  0x77   :  { %1005 = vmatmul.mubr.bf16.vlgmr.msra.gmra.mrb[4].mxu0 %v838_v19  ;;  %1048 = vmatprep.subr.bf16.mxu1 %v1118_v43 }
  0x78   :  { %1029 = vmatpush3.bf16.msra.mxu0 %v1103_v28  ;;  %v1124_v28 = vld [vmem:[#allocation7 + $0xb0] sm:$0xff]  }
  0x79   :  { %1030 = vmatprep.subr.bf16.mxu0 %v1105_v30 }
  0x7c   :  { %1031 = vmatpush3.bf16.msra.mxu0 %v1105_v30  ;;  %v798_v30 = vunpack.c.l.bf16 %v1306_v10 }
  0x7d   :  { %1032 = vmatprep.subr.bf16.mxu0 %v1107_v32 }
  0x80   :  { %1033 = vmatpush3.bf16.msra.mxu0 %v1107_v32  ;;  %v801_v32 = vrot.slane %v798_v30, 2 }
  0x81   :  { %1034 = vmatprep.subr.bf16.mxu0 %v1109_v34 }
  0x82   :  { %v806_v35 = vsel %vm424_vm1, %v803_v33, %v801_v32 }
  0x84   :  { %1035 = vmatpush3.bf16.msra.mxu0 %v1109_v34  ;;  %v799_v34 = vunpack.c.h.bf16 %v1306_v10 }
  0x85   :  { %1036 = vmatprep.subr.bf16.mxu0 %v1111_v36 }
  0x88   :  { %1037 = vmatpush3.bf16.msra.mxu0 %v1111_v36  ;;  %v802_v36 = vrot.slane %v799_v34, 2 }
  0x89   :  { %1038 = vmatprep.subr.bf16.mxu0 %v1113_v38 }
  0x8a   :  { %v804_v37 = vsel %vm424_vm1, %v802_v36, %v803_v33 }
  0x8c   :  { %1039 = vmatpush3.bf16.msra.mxu0 %v1113_v38 }
  0x8d   :  { %1040 = vmatprep.subr.bf16.mxu0 %v1115_v40 }
  0x90   :  { %1041 = vmatpush3.bf16.msra.mxu0 %v1115_v40 }
  0x91   :  { %1042 = vmatprep.subr.bf16.mxu0 %v1117_v42 }
  0x94   :  { %1043 = vmatpush3.bf16.msra.mxu0 %v1117_v42 }
 0x12a   :  { %v966_v46 = vpop.f32.mrb[0].mxu0 }
 0x12b   :  { %v205_v47 = vrot.slane %v966_v46, 1  ;;  %v189_v48 = vpop.f32.mrb[1].mxu0  ;;  %v986_v49 = vpop.f32.mrb[0].mxu1 }
 0x12c   :  { %v203_v50 = vrot.slane %v189_v48, 1  ;;  %v967_v51 = vpop.f32.mrb[2].mxu0  ;;  %v294_v52 = vpop.f32.mrb[1].mxu1 }
 0x12d   :  { %v192_v53 = vpop.f32.mrb[3].mxu0  ;;  %v987_v54 = vpop.f32.mrb[2].mxu1 }
 0x12e   :  { %v204_v55 = vrot.slane %v192_v53, 1  ;;  %v211_v56 = vsel %vm208_vm0, %v205_v47, %v203_v50  ;;  %v297_v57 = vpop.f32.mrb[3].mxu1 }
 0x12f   :  { %v303_v58 = vadd.f32 %v986_v49, %v211_v56 }
 0x130   :  { %v210_v59 = vsel %vm208_vm0, %v203_v50, %v204_v55  ;;  %v209_v60 = vsel %vm208_vm0, %v204_v55, %v205_v47 }
 0x131   :  { %v295_v61 = vadd.f32 %v294_v52, %v210_v59  ;;  %v298_v62 = vadd.f32 %v297_v57, %v209_v60 }
 0x14a   :  { %v1006_v63 = vpop.f32.mrb[4].mxu0 }
 0x14b   :  { %v423_v0 = vrot.slane %v1006_v63, 2  ;;  %v407_v1 = vpop.f32.mrb[5].mxu0 }
 0x14c   :  { %v421_v2 = vrot.slane %v407_v1, 2  ;;  %v1007_v3 = vpop.f32.mrb[6].mxu0 }
 0x14d   :  { %v410_v4 = vpop.f32.mrb[7].mxu0 }
 0x14e   :  { %v427_v6 = vsel %vm424_vm1, %v423_v0, %v421_v2  ;;  %v422_v7 = vrot.slane %v410_v4, 2  ;;  %v805_v4 = vsel %vm424_vm1, %v801_v32, %v802_v36 }
 0x14f   :  { %v430_v8 = vadd.f32 %v427_v6, %v303_v58 }
 0x150   :  { %v425_v9 = vsel %vm424_vm1, %v422_v7, %v423_v0  ;;  %v426_v11 = vsel %vm424_vm1, %v421_v2, %v422_v7 }
 0x151   :  { %v439_v12 = vadd.f32 %v1328_v5, %v430_v8  ;;  %v428_v13 = vadd.f32 %v426_v11, %v295_v61  ;;  %v429_v14 = vadd.f32 %v425_v9, %v298_v62 }
 0x153   :  { %v437_v15 = vadd.f32 %v1328_v5, %v428_v13  ;;  %v438_v16 = vadd.f32 %v1328_v5, %v429_v14  ;;  %v442_v18 = vmax.f32 %v439_v12, 0.0 }
 0x155   :  { %v440_v19 = vmax.f32 %v437_v15, 0.0  ;;  %v441_v20 = vmax.f32 %v438_v16, 0.0  ;;  %v444_v22 = vpack.c.bf16 %v442_v18, %v442_v18 }
 0x157   :  { %v443_v21 = vpack.c.bf16 %v441_v20, %v440_v19 }
 0x159   :  { %1024 = vmatprep.mubr.bf16.mxu1 %v443_v21  ;;  %1044 = vmatprep.mubr.bf16.mxu0 %v443_v21 }
 0x15a   :  { %1025 = vmatmul.mubr.bf16.vlgmr.msra.gmra.mrb[4].mxu1 %v444_v22  ;;  %1045 = vmatmul.mubr.bf16.vlgmr.msra.gmra.mrb[8].mxu0 %v444_v22 }
 0x15b   :  { %1049 = vmatpush3.bf16.msra.mxu1 %v1118_v43  ;;  %1064 = vmatprep.mubr.bf16.mxu1 %v443_v21 }
 0x15c   :  { %1050 = vmatprep.subr.bf16.mxu1 %v1119_v23 }
 0x15f   :  { %1051 = vmatpush3.bf16.msra.mxu1 %v1119_v23 }
 0x160   :  { %1052 = vmatprep.subr.bf16.mxu1 %v1120_v24 }
 0x163   :  { %1053 = vmatpush3.bf16.msra.mxu1 %v1120_v24 }
 0x164   :  { %1054 = vmatprep.subr.bf16.mxu1 %v1121_v25 }
 0x167   :  { %1055 = vmatpush3.bf16.msra.mxu1 %v1121_v25 }
 0x168   :  { %1056 = vmatprep.subr.bf16.mxu1 %v1122_v26 }
 0x16b   :  { %1057 = vmatpush3.bf16.msra.mxu1 %v1122_v26 }
 0x16c   :  { %1058 = vmatprep.subr.bf16.mxu1 %v1123_v27 }
 0x16f   :  { %1059 = vmatpush3.bf16.msra.mxu1 %v1123_v27 }
 0x170   :  { %1060 = vmatprep.subr.bf16.mxu1 %v1124_v28 }
 0x173   :  { %1061 = vmatpush3.bf16.msra.mxu1 %v1124_v28 }
 0x174   :  { %1062 = vmatprep.subr.bf16.mxu1 %v1125_v29 }
 0x177   :  { %1063 = vmatpush3.bf16.msra.mxu1 %v1125_v29 }
 0x17a   :  { %1065 = vmatmul.mubr.bf16.vlgmr.msra.gmra.mrb[8].mxu1 %v444_v22 }
 0x22d   :  { %v1026_v38 = vpop.f32.mrb[4].mxu1  ;;  %v1046_v39 = vpop.f32.mrb[8].mxu0 }
 0x22e   :  { %v576_v40 = vrot.slane %v1026_v38, 1  ;;  %v560_v41 = vpop.f32.mrb[5].mxu1  ;;  %v662_v42 = vpop.f32.mrb[9].mxu0 }
 0x22f   :  { %v574_v43 = vrot.slane %v560_v41, 1  ;;  %v1027_v44 = vpop.f32.mrb[6].mxu1  ;;  %v1047_v46 = vpop.f32.mrb[10].mxu0 }
 0x230   :  { %v563_v17 = vpop.f32.mrb[7].mxu1  ;;  %v665_v47 = vpop.f32.mrb[11].mxu0 }
 0x231   :  { %v579_v10 = vsel %vm208_vm0, %v576_v40, %v574_v43  ;;  %v575_v48 = vrot.slane %v563_v17, 1 }
 0x232   :  { %v671_v49 = vadd.f32 %v1046_v39, %v579_v10 }
 0x233   :  { %v578_v50 = vsel %vm208_vm0, %v574_v43, %v575_v48  ;;  %v577_v51 = vsel %vm208_vm0, %v575_v48, %v576_v40 }
 0x234   :  { %v663_v52 = vadd.f32 %v662_v42, %v578_v50  ;;  %v666_v53 = vadd.f32 %v665_v47, %v577_v51 }
 0x24d   :  { %v1066_v54 = vpop.f32.mrb[8].mxu1 }
 0x24e   :  { %v791_v55 = vrot.slane %v1066_v54, 2  ;;  %v775_v56 = vpop.f32.mrb[9].mxu1 }
 0x24f   :  { %v789_v57 = vrot.slane %v775_v56, 2  ;;  %v1067_v58 = vpop.f32.mrb[10].mxu1 }
 0x250   :  { %v778_v59 = vpop.f32.mrb[11].mxu1 }
 0x251   :  { %v794_v60 = vsel %vm424_vm1, %v791_v55, %v789_v57  ;;  %v790_v61 = vrot.slane %v778_v59, 2 }
 0x252   :  { %v797_v62 = vadd.f32 %v794_v60, %v671_v49 }
 0x253   :  { %v792_v63 = vsel %vm424_vm1, %v790_v61, %v791_v55  ;;  %v793_v0 = vsel %vm424_vm1, %v789_v57, %v790_v61 }
 0x254   :  { %v809_v1 = vadd.f32 %v1328_v5, %v797_v62  ;;  %v795_v2 = vadd.f32 %v793_v0, %v663_v52  ;;  %v796_v3 = vadd.f32 %v792_v63, %v666_v53 }
 0x256   :  { %v812_v6 = vadd.f32 %v809_v1, %v806_v35  ;;  %v807_v7 = vadd.f32 %v1328_v5, %v795_v2  ;;  %v808_v8 = vadd.f32 %v1328_v5, %v796_v3 }
 0x258   :  { %v815_v9 = vmax.f32 %v812_v6, 0.0  ;;  %v810_v11 = vadd.f32 %v807_v7, %v805_v4  ;;  %v811_v12 = vadd.f32 %v808_v8, %v804_v37 }
 0x25a   :  { %818 = vst [vmem:[#allocation8 + $0x10] sm:$0xff] %v815_v9  ;;  %v813_v13 = vmax.f32 %v810_v11, 0.0  ;;  %v814_v14 = vmax.f32 %v811_v12, 0.0 }
 0x25c   :  { %816 = vst [vmem:[#allocation8] sm:$0xff] %v813_v13  ;;  %817 = vst [vmem:[#allocation8 + $0x8] sm:$0xff] %v814_v14 }
 0x25d   :  { %1204 = shalt.err (!%p1201_p0)
}
 0x25e   :  { %s1205_s30 = scalar_lea.hbm %s1379_s4, 384 }
 0x25f   :  { %p1206_p1 = scmp.ne.s32.totalorder %s1379_s4, %s1205_s30  ;;  %p1209_p2 = scmp.lt.u32.totalorder %s1205_s30, %s1379_s4 }
 0x261   :  { %p1211_p3 = pnand %p1209_p2, %p1206_p1 }
 0x263   :  { %1214 = shalt.err (!%p1211_p3)
}
 0x264   :  { %s1227_s9 = smov 128   ;;  %s1228_s10 = smov 8  }
 0x265   :  { %830 = dma.vmem_to_hbm [thread:$0]  %s825_s26, 384, %s1379_s4, [#allocation4], %s1227_s9, %s1227_s9, %s1228_s10  }
 0x266   :  { %1219 = dma.done.wait [#allocation4], 384  }
 0x267   :  { %1220 = vsyncadd [#allocation4], 4294966912 }
 0x268   :  { %834 = vsyncpa [#allocation3], 1 }
 0x269   :  { %835 = vsyncpa [#allocation6], 1 }
 0x26a   :  { %836 = vsyncpa [#allocation4], 1 }

</bundles_post_ra>
